<compile_context>
chip_gen: v5e
topology: v5e:2x2
jax: 0.10.0
libtpu: 0.0.40
codegen_flags: <defaults>
</compile_context>

<pallas_src>
import functools
import types

import jax
import jax.numpy as jnp
from jax.experimental import pallas as pl
from jax.experimental.pallas import tpu as pltpu

_BETA = 0.5                 # SmoothL1Loss(beta=0.5) in the reference
_INV_2BETA = 0.5 / _BETA    # constant-folded: avoids a per-element divide
_MAX_LANE_TILE = 1536       # multiple of lcm(3, 128) = 384; sweepable


def _round_up(x, m):
    return ((x + m - 1) // m) * m


def _elem_loss(diff, loss_type):
    """Elementwise L1 or SmoothL1(beta=0.5) — VPU-only ops."""
    ad = jnp.abs(diff)
    if loss_type == "l1":
        return ad
    elif loss_type == "smoothl1":
        return jnp.where(ad < _BETA, diff * diff * _INV_2BETA, ad - 0.5 * _BETA)
    else:
        raise NotImplementedError(loss_type)


def _vote_loss_kernel(*refs, loss_type, n_flat, lane_tile, scales):
    """Fused Rot1/Rot2 vote loss over the flat (bs, n_pts*3) layout.

    refs layout:
      refs[0]            pc_ref    (bs, lane_tile)        point-cloud lane tile
      refs[1 : 1+n_v]    vote_refs (bs, lane_tile) each   vote lane tiles
      refs[1+n_v]        kpt_ref   (n_v, bs, lane_tile)   repeating xyz keypoint pattern
      refs[2+n_v]        out_ref   (1, n_v) SMEM          weighted scalar losses
      refs[3+n_v]        acc_ref   (n_v, bs, lane_tile)   VMEM partial-sum accumulator
    """
    n_v = len(scales)
    pc_ref = refs[0]
    vote_refs = refs[1:1 + n_v]
    kpt_ref = refs[1 + n_v]
    out_ref = refs[2 + n_v]
    acc_ref = refs[3 + n_v]

    i = pl.program_id(0)

    @pl.when(i == 0)
    def _init():
        acc_ref[...] = jnp.zeros_like(acc_ref)

    pc = pc_ref[...].astype(jnp.float32)              # (bs, lane_tile)

    need_mask = (n_flat % lane_tile) != 0
    if need_mask:
        col = (jax.lax.broadcasted_iota(jnp.int32, (1, lane_tile), 1)
               + i * lane_tile)
        valid = col < n_flat                          # broadcasts over rows

    for v in range(n_v):                              # static unroll (n_v <= 2)
        vote = vote_refs[v][...].astype(jnp.float32)  # (bs, lane_tile)
        kpt = kpt_ref[v].astype(jnp.float32)          # (bs, lane_tile), xyz repeating
        diff = vote - kpt + pc                        # vote - (kpt - pc)
        loss = _elem_loss(diff, loss_type)
        if need_mask:
            loss = jnp.where(valid, loss, 0.0)
        acc_ref[v] += loss                            # VPU-only per-step work

    @pl.when(i == pl.num_programs(0) - 1)
    def _finalize():
        for v in range(n_v):
            # full reduce + weight/(bs*n_pts*3) normalization, once.
            out_ref[0, v] = jnp.sum(acc_ref[v]) * scales[v]


def _fused_vote_losses(pc, votes, kpts, weights, loss_type):
    """Equivalent of cal_loss_Rot1/Rot2 (for 1 or 2 vote tensors), fused.

    pc:     (bs, n_pts, 3)
    votes:  list of (bs, n_pts, 3)
    kpts:   list of (bs, 3)  precomputed per-batch keypoints
    Returns list of weighted scalar losses (same order as `votes`).
    """
    bs, n_pts, _ = pc.shape
    n_v = len(votes)
    n_flat = n_pts * 3

    # Lane tile must be a multiple of 384 so the xyz pattern repeats per tile.
    lane_tile = min(_MAX_LANE_TILE, _round_up(n_flat, 384))
    grid = (pl.cdiv(n_flat, lane_tile),)

    # Free (contiguous) reshapes — no HBM copies.
    pc_2d = pc.reshape(bs, n_flat)
    votes_2d = [v.reshape(bs, n_flat) for v in votes]

    # Tiny precomputed lane-repeating keypoint pattern: (n_v, bs, lane_tile).
    kpt_arr = jnp.stack(kpts, axis=0).astype(jnp.float32)        # (n_v, bs, 3)
    kpt_tile = jnp.tile(kpt_arr, (1, 1, lane_tile // 3))         # (n_v, bs, lane_tile)

    # Fold the weight and the /(bs*n_pts*3) mean normalization into the kernel.
    scales = tuple(float(w) / float(bs * n_pts * 3) for w in weights)

    kernel = functools.partial(
        _vote_loss_kernel,
        loss_type=loss_type, n_flat=n_flat, lane_tile=lane_tile, scales=scales)

    big_spec = pl.BlockSpec((bs, lane_tile), lambda i: (0, i))
    in_specs = ([big_spec] + [big_spec] * n_v +
                [pl.BlockSpec((n_v, bs, lane_tile), lambda i: (0, 0, 0))])

    out = pl.pallas_call(
        kernel,
        out_shape=jax.ShapeDtypeStruct((1, n_v), jnp.float32),
        grid=grid,
        in_specs=in_specs,
        out_specs=pl.BlockSpec((1, n_v), lambda i: (0, 0),
                               memory_space=pltpu.MemorySpace.SMEM),
        scratch_shapes=[pltpu.VMEM((n_v, bs, lane_tile), jnp.float32)],
        compiler_params=pltpu.CompilerParams(
            dimension_semantics=("arbitrary",),      # reduction over lane tiles
            vmem_limit_bytes=32 * 1024 * 1024,       # safe on v5e/v6e/v7x
        ),
    )(pc_2d, *votes_2d, kpt_tile)

    return [out[0, v] for v in range(n_v)]


def _tran_loss(pred, gt, loss_type):
    """cal_loss_Tran: mean elementwise loss over (bs, 3) — too tiny for a
    pallas_call launch, so plain JAX."""
    diff = pred.astype(jnp.float32) - gt.astype(jnp.float32)
    return jnp.mean(_elem_loss(diff, loss_type))


class PoseLossPallas:
    """JAX/Pallas port of Pose_loss (forward pass semantics)."""

    def __init__(self, cfg):
        self.cfg = cfg
        if cfg.pose_loss_type not in ("l1", "smoothl1"):
            raise NotImplementedError(cfg.pose_loss_type)

    def __call__(self, name_list, pred_list, gt_list):
        cfg = self.cfg
        lt = cfg.pose_loss_type
        loss_list = {k: 0.0 for k in
                     ("Rot1", "Rot1_cos", "Rot2", "Rot2_cos", "Rot_regular", "Tran")}

        votes, kpts, weights, names = [], [], [], []
        if ("Rot1" in name_list) or ("Rot2" in name_list):
            gt_R, gt_t, gt_s = gt_list["R"], gt_list["T"], gt_list["Size"]

        if "Rot1" in name_list:
            # kpt = R @ [0, 0, s_z]^T + t  ==  R[:, :, 2] * s_z + t   (per batch)
            kpt1 = gt_R[:, :, 2] * gt_s[:, 2:3] + gt_t
            votes.append(pred_list["Vote1"]); kpts.append(kpt1)
            weights.append(cfg.rot_1_w); names.append("Rot1")

        if "Rot2" in name_list:
            # kpt = R @ [0, s_y, 0]^T + t  ==  R[:, :, 1] * s_y + t   (per batch)
            kpt2 = gt_R[:, :, 1] * gt_s[:, 1:2] + gt_t
            votes.append(pred_list["Vote2"]); kpts.append(kpt2)
            weights.append(cfg.rot_2_w); names.append("Rot2")

        if votes:
            results = _fused_vote_losses(gt_list["Points"], votes, kpts, weights, lt)
            for n, r in zip(names, results):
                loss_list[n] = r

        # TODO(synk): cal_cosine_dis1 / cal_cosine_dis2 / cal_rot_regular_angle are
        # referenced by forward() but not defined in the provided reference source,
        # so 'Rot1_cos' / 'Rot2_cos' / 'Rot_regular' stay at their 0.0 defaults.

        if "Tran" in name_list:
            loss_list["Tran"] = cfg.tran_w * _tran_loss(pred_list["T"], gt_list["T"], lt)

        return loss_list


if __name__ == "__main__":
    key = jax.random.PRNGKey(0)
    bs, n_pts = 2, 1000   # n_flat=3000: exercises multi-tile grid (2 x 1536) + tail masking

    ks = jax.random.split(key, 7)
    PC = jax.random.normal(ks[0], (bs, n_pts, 3), jnp.float32)
    Vote1 = jax.random.normal(ks[1], (bs, n_pts, 3), jnp.float32)
    Vote2 = jax.random.normal(ks[2], (bs, n_pts, 3), jnp.float32)
    R = jax.random.normal(ks[3], (bs, 3, 3), jnp.float32)
    T_gt = jax.random.normal(ks[4], (bs, 3), jnp.float32)
    Size = jnp.abs(jax.random.normal(ks[5], (bs, 3), jnp.float32)) + 0.1
    T_pred = jax.random.normal(ks[6], (bs, 3), jnp.float32)

    cfg = types.SimpleNamespace(
        pose_loss_type="smoothl1",
        rot_1_w=2.0, rot_2_w=2.0, rot_regular_w=1.0, tran_w=5.0,
    )

    loss_mod = PoseLossPallas(cfg)
    name_list = ["Rot1", "Rot2", "Tran"]
    pred_list = {"Vote1": Vote1, "Vote2": Vote2, "T": T_pred}
    gt_list = {"Points": PC, "R": R, "T": T_gt, "Size": Size}

    out = loss_mod(name_list, pred_list, gt_list)
    for k in ("Rot1", "Rot2", "Tran"):
        jax.block_until_ready(out[k])

    # ---- pure-JAX reference check (mirrors the PyTorch math) ----
    def ref_elem(d):
        ad = jnp.abs(d)
        if cfg.pose_loss_type == "l1":
            return ad
        return jnp.where(ad < _BETA, 0.5 * d * d / _BETA, ad - 0.5 * _BETA)

    def ref_kpt(kpt_cano):
        return jnp.einsum("bij,bj->bi", R, kpt_cano) + T_gt

    cano1 = jnp.stack([jnp.zeros(bs), jnp.zeros(bs), Size[:, 2]], axis=1)
    cano2 = jnp.stack([jnp.zeros(bs), Size[:, 1], jnp.zeros(bs)], axis=1)
    gtv1 = ref_kpt(cano1)[:, None, :] - PC
    gtv2 = ref_kpt(cano2)[:, None, :] - PC
    ref_rot1 = cfg.rot_1_w * jnp.mean(ref_elem(Vote1 - gtv1))
    ref_rot2 = cfg.rot_2_w * jnp.mean(ref_elem(Vote2 - gtv2))
    ref_tran = cfg.tran_w * jnp.mean(ref_elem(T_pred - T_gt))

    assert jnp.allclose(out["Rot1"], ref_rot1, rtol=1e-5, atol=1e-5), (out["Rot1"], ref_rot1)
    assert jnp.allclose(out["Rot2"], ref_rot2, rtol=1e-5, atol=1e-5), (out["Rot2"], ref_rot2)
    assert jnp.allclose(out["Tran"], ref_tran, rtol=1e-5, atol=1e-5), (out["Tran"], ref_tran)

    # Also exercise the single-vote (Rot1-only) path once.
    out1 = loss_mod(["Rot1"], pred_list, gt_list)
    jax.block_until_ready(out1["Rot1"])
    assert jnp.allclose(out1["Rot1"], ref_rot1, rtol=1e-5, atol=1e-5), (out1["Rot1"], ref_rot1)

    # And an exactly tile-divisible size (no masking path), l1 loss.
    n_pts2 = 512  # n_flat = 1536 == lane_tile
    PC2 = jax.random.normal(ks[0], (bs, n_pts2, 3), jnp.float32)
    V2 = jax.random.normal(ks[1], (bs, n_pts2, 3), jnp.float32)
    cfg2 = types.SimpleNamespace(pose_loss_type="l1", rot_1_w=1.5, rot_2_w=1.0,
                                 rot_regular_w=1.0, tran_w=1.0)
    out2 = PoseLossPallas(cfg2)(["Rot1"], {"Vote1": V2, "T": T_pred},
                                {"Points": PC2, "R": R, "T": T_gt, "Size": Size})
    jax.block_until_ready(out2["Rot1"])
    gtv = ref_kpt(cano1)[:, None, :] - PC2
    ref2 = cfg2.rot_1_w * jnp.mean(jnp.abs(V2 - gtv))
    assert jnp.allclose(out2["Rot1"], ref2, rtol=1e-5, atol=1e-5), (out2["Rot1"], ref2)

    print("KERNEL_OK")
</pallas_src>

<mosaic_0001>
module attributes {stable_mosaic.version = 11 : i64} {
  func.func @_vote_loss_kernel(%arg0: i32, %arg1: memref<2x1536xf32, #tpu.memory_space<vmem>>, %arg2: memref<2x1536xf32, #tpu.memory_space<vmem>>, %arg3: memref<2x1536xf32, #tpu.memory_space<vmem>>, %arg4: memref<2x2x1536xf32, #tpu.memory_space<vmem>>, %arg5: memref<1x2xf32, #tpu.memory_space<smem>>, %arg6: memref<2x2x1536xf32, #tpu.memory_space<vmem>>) attributes {dimension_semantics = [#tpu.dimension_semantics<arbitrary>], iteration_bounds = array<i64: 2>, scalar_prefetch = 0 : i64, scratch_operands = 1 : i64, tpu.core_type = #tpu.core_type<tc>, window_params = [{transform_indices = @transform_0, window_bounds = array<i64: 2, 1536>}, {transform_indices = @transform_1, window_bounds = array<i64: 2, 1536>}, {transform_indices = @transform_2, window_bounds = array<i64: 2, 1536>}, {pipeline_mode = #tpu.pipeline_mode<synchronous>, transform_indices = @transform_3, window_bounds = array<i64: 2, 2, 1536>}, {transform_indices = @transform_4, window_bounds = array<i64: 1, 2>}]} {
    %c0_i32 = arith.constant 0 : i32
    %0 = arith.cmpi eq, %arg0, %c0_i32 : i32
    %1 = arith.extui %0 : i1 to i32
    %c0_i32_0 = arith.constant 0 : i32
    %2 = arith.cmpi ne, %1, %c0_i32_0 : i32
    scf.if %2 {
      %cst_31 = arith.constant 0.000000e+00 : f32
      %61 = vector.broadcast %cst_31 : f32 to vector<2x2x1536xf32>
      %c0_32 = arith.constant 0 : index
      %c0_33 = arith.constant 0 : index
      %c0_34 = arith.constant 0 : index
      %62 = vector.load %arg6[%c0_32, %c0_33, %c0_34] : memref<2x2x1536xf32, #tpu.memory_space<vmem>>, vector<2x2x1536xf32>
      tpu.vector_store %arg6[%c0_32, %c0_33, %c0_34], %61 {strides = array<i32>} : memref<2x2x1536xf32, #tpu.memory_space<vmem>>, vector<2x2x1536xf32>,
    } else {
    }
    %c0 = arith.constant 0 : index
    %c0_1 = arith.constant 0 : index
    %3 = vector.load %arg1[%c0, %c0_1] : memref<2x1536xf32, #tpu.memory_space<vmem>>, vector<2x1536xf32>
    %4 = tpu.iota {dimensions = array<i32: 1>} : vector<1x1536xi32>
    %c1536_i32 = arith.constant 1536 : i32
    %5 = arith.muli %arg0, %c1536_i32 : i32
    %6 = vector.broadcast %5 : i32 to vector<1x1536xi32>
    %7 = arith.addi %4, %6 : vector<1x1536xi32>
    %c3000_i32 = arith.constant 3000 : i32
    %8 = vector.broadcast %c3000_i32 : i32 to vector<1x1536xi32>
    %9 = arith.cmpi slt, %7, %8 : vector<1x1536xi32>
    %c0_2 = arith.constant 0 : index
    %c0_3 = arith.constant 0 : index
    %10 = vector.load %arg2[%c0_2, %c0_3] : memref<2x1536xf32, #tpu.memory_space<vmem>>, vector<2x1536xf32>
    %c0_4 = arith.constant 0 : index
    %c0_5 = arith.constant 0 : index
    %c0_6 = arith.constant 0 : index
    %11 = vector.load %arg4[%c0_4, %c0_5, %c0_6] : memref<2x2x1536xf32, #tpu.memory_space<vmem>>, vector<1x2x1536xf32>
    %12 = vector.shape_cast %11 : vector<1x2x1536xf32> to vector<2x1536xf32>
    %13 = arith.subf %10, %12 : vector<2x1536xf32>
    %14 = arith.addf %13, %3 : vector<2x1536xf32>
    %15 = math.absf %14 : vector<2x1536xf32>
    %cst = arith.constant 5.000000e-01 : f32
    %16 = vector.broadcast %cst : f32 to vector<2x1536xf32>
    %17 = arith.cmpf olt, %15, %16 : vector<2x1536xf32>
    %18 = arith.mulf %14, %14 : vector<2x1536xf32>
    %cst_7 = arith.constant 1.000000e+00 : f32
    %19 = vector.broadcast %cst_7 : f32 to vector<2x1536xf32>
    %20 = arith.mulf %18, %19 : vector<2x1536xf32>
    %cst_8 = arith.constant 2.500000e-01 : f32
    %21 = vector.broadcast %cst_8 : f32 to vector<2x1536xf32>
    %22 = arith.subf %15, %21 : vector<2x1536xf32>
    %23 = arith.select %17, %20, %22 : vector<2x1536xi1>, vector<2x1536xf32>
    %cst_9 = arith.constant 0.000000e+00 : f32
    %24 = vector.shape_cast %9 : vector<1x1536xi1> to vector<1x1536xi1>
    %25 = vector.broadcast %24 : vector<1x1536xi1> to vector<2x1536xi1>
    %26 = vector.broadcast %cst_9 : f32 to vector<2x1536xf32>
    %27 = arith.select %25, %23, %26 : vector<2x1536xi1>, vector<2x1536xf32>
    %c0_10 = arith.constant 0 : index
    %c0_11 = arith.constant 0 : index
    %c0_12 = arith.constant 0 : index
    %28 = vector.load %arg6[%c0_10, %c0_11, %c0_12] : memref<2x2x1536xf32, #tpu.memory_space<vmem>>, vector<1x2x1536xf32>
    %29 = vector.shape_cast %28 : vector<1x2x1536xf32> to vector<2x1536xf32>
    %30 = arith.addf %29, %27 : vector<2x1536xf32>
    %c0_13 = arith.constant 0 : index
    %c0_14 = arith.constant 0 : index
    %c0_15 = arith.constant 0 : index
    %31 = vector.load %arg6[%c0_13, %c0_14, %c0_15] : memref<2x2x1536xf32, #tpu.memory_space<vmem>>, vector<1x2x1536xf32>
    %32 = vector.shape_cast %31 : vector<1x2x1536xf32> to vector<2x1536xf32>
    %33 = vector.shape_cast %30 : vector<2x1536xf32> to vector<1x2x1536xf32>
    tpu.vector_store %arg6[%c0_13, %c0_14, %c0_15], %33 {strides = array<i32>} : memref<2x2x1536xf32, #tpu.memory_space<vmem>>, vector<1x2x1536xf32>,
    %c0_16 = arith.constant 0 : index
    %c0_17 = arith.constant 0 : index
    %34 = vector.load %arg3[%c0_16, %c0_17] : memref<2x1536xf32, #tpu.memory_space<vmem>>, vector<2x1536xf32>
    %c1 = arith.constant 1 : index
    %c0_18 = arith.constant 0 : index
    %c0_19 = arith.constant 0 : index
    %35 = vector.load %arg4[%c1, %c0_18, %c0_19] : memref<2x2x1536xf32, #tpu.memory_space<vmem>>, vector<1x2x1536xf32>
    %36 = vector.shape_cast %35 : vector<1x2x1536xf32> to vector<2x1536xf32>
    %37 = arith.subf %34, %36 : vector<2x1536xf32>
    %38 = arith.addf %37, %3 : vector<2x1536xf32>
    %39 = math.absf %38 : vector<2x1536xf32>
    %cst_20 = arith.constant 5.000000e-01 : f32
    %40 = vector.broadcast %cst_20 : f32 to vector<2x1536xf32>
    %41 = arith.cmpf olt, %39, %40 : vector<2x1536xf32>
    %42 = arith.mulf %38, %38 : vector<2x1536xf32>
    %cst_21 = arith.constant 1.000000e+00 : f32
    %43 = vector.broadcast %cst_21 : f32 to vector<2x1536xf32>
    %44 = arith.mulf %42, %43 : vector<2x1536xf32>
    %cst_22 = arith.constant 2.500000e-01 : f32
    %45 = vector.broadcast %cst_22 : f32 to vector<2x1536xf32>
    %46 = arith.subf %39, %45 : vector<2x1536xf32>
    %47 = arith.select %41, %44, %46 : vector<2x1536xi1>, vector<2x1536xf32>
    %cst_23 = arith.constant 0.000000e+00 : f32
    %48 = vector.shape_cast %9 : vector<1x1536xi1> to vector<1x1536xi1>
    %49 = vector.broadcast %48 : vector<1x1536xi1> to vector<2x1536xi1>
    %50 = vector.broadcast %cst_23 : f32 to vector<2x1536xf32>
    %51 = arith.select %49, %47, %50 : vector<2x1536xi1>, vector<2x1536xf32>
    %c1_24 = arith.constant 1 : index
    %c0_25 = arith.constant 0 : index
    %c0_26 = arith.constant 0 : index
    %52 = vector.load %arg6[%c1_24, %c0_25, %c0_26] : memref<2x2x1536xf32, #tpu.memory_space<vmem>>, vector<1x2x1536xf32>
    %53 = vector.shape_cast %52 : vector<1x2x1536xf32> to vector<2x1536xf32>
    %54 = arith.addf %53, %51 : vector<2x1536xf32>
    %c1_27 = arith.constant 1 : index
    %c0_28 = arith.constant 0 : index
    %c0_29 = arith.constant 0 : index
    %55 = vector.load %arg6[%c1_27, %c0_28, %c0_29] : memref<2x2x1536xf32, #tpu.memory_space<vmem>>, vector<1x2x1536xf32>
    %56 = vector.shape_cast %55 : vector<1x2x1536xf32> to vector<2x1536xf32>
    %57 = vector.shape_cast %54 : vector<2x1536xf32> to vector<1x2x1536xf32>
    tpu.vector_store %arg6[%c1_27, %c0_28, %c0_29], %57 {strides = array<i32>} : memref<2x2x1536xf32, #tpu.memory_space<vmem>>, vector<1x2x1536xf32>,
    %c1_i32 = arith.constant 1 : i32
    %58 = arith.cmpi eq, %arg0, %c1_i32 : i32
    %59 = arith.extui %58 : i1 to i32
    %c0_i32_30 = arith.constant 0 : i32
    %60 = arith.cmpi ne, %59, %c0_i32_30 : i32
    scf.if %60 {
      %c0_31 = arith.constant 0 : index
      %c0_32 = arith.constant 0 : index
      %c0_33 = arith.constant 0 : index
      %61 = vector.load %arg6[%c0_31, %c0_32, %c0_33] : memref<2x2x1536xf32, #tpu.memory_space<vmem>>, vector<1x2x1536xf32>
      %62 = vector.shape_cast %61 : vector<1x2x1536xf32> to vector<2x1536xf32>
      %63 = vector.shape_cast %62 : vector<2x1536xf32> to vector<1x2x1536xf32>
      %cst_34 = arith.constant dense<0.000000e+00> : vector<1xf32>
      %64 = vector.multi_reduction <add>, %63, %cst_34 [1, 2] : vector<1x2x1536xf32> to vector<1xf32>
      %65 = vector.shape_cast %64 : vector<1xf32> to vector<1x1x1xf32>
      %66 = vector.extract %65[0, 0, 0] : f32 from vector<1x1x1xf32>
      %cst_35 = arith.constant 3.3333333E-4 : f32
      %67 = arith.mulf %66, %cst_35 : f32
      %c0_36 = arith.constant 0 : index
      %c0_37 = arith.constant 0 : index
      %68 = memref.load %arg5[%c0_36, %c0_37] : memref<1x2xf32, #tpu.memory_space<smem>>
      memref.store %67, %arg5[%c0_36, %c0_37] : memref<1x2xf32, #tpu.memory_space<smem>>
      %c1_38 = arith.constant 1 : index
      %c0_39 = arith.constant 0 : index
      %c0_40 = arith.constant 0 : index
      %69 = vector.load %arg6[%c1_38, %c0_39, %c0_40] : memref<2x2x1536xf32, #tpu.memory_space<vmem>>, vector<1x2x1536xf32>
      %70 = vector.shape_cast %69 : vector<1x2x1536xf32> to vector<2x1536xf32>
      %71 = vector.shape_cast %70 : vector<2x1536xf32> to vector<1x2x1536xf32>
      %cst_41 = arith.constant dense<0.000000e+00> : vector<1xf32>
      %72 = vector.multi_reduction <add>, %71, %cst_41 [1, 2] : vector<1x2x1536xf32> to vector<1xf32>
      %73 = vector.shape_cast %72 : vector<1xf32> to vector<1x1x1xf32>
      %74 = vector.extract %73[0, 0, 0] : f32 from vector<1x1x1xf32>
      %cst_42 = arith.constant 3.3333333E-4 : f32
      %75 = arith.mulf %74, %cst_42 : f32
      %c0_43 = arith.constant 0 : index
      %c1_44 = arith.constant 1 : index
      %76 = memref.load %arg5[%c0_43, %c1_44] : memref<1x2xf32, #tpu.memory_space<smem>>
      memref.store %75, %arg5[%c0_43, %c1_44] : memref<1x2xf32, #tpu.memory_space<smem>>
    } else {
    }
    return
  }
  func.func @transform_0(%arg0: i32) -> (i32, i32) {
    %c0_i32 = arith.constant 0 : i32
    %c0_i32_0 = arith.constant 0 : i32
    return %c0_i32, %arg0 : i32, i32
  }
  func.func @transform_1(%arg0: i32) -> (i32, i32) {
    %c0_i32 = arith.constant 0 : i32
    %c0_i32_0 = arith.constant 0 : i32
    return %c0_i32, %arg0 : i32, i32
  }
  func.func @transform_2(%arg0: i32) -> (i32, i32) {
    %c0_i32 = arith.constant 0 : i32
    %c0_i32_0 = arith.constant 0 : i32
    return %c0_i32, %arg0 : i32, i32
  }
  func.func @transform_3(%arg0: i32) -> (i32, i32, i32) {
    %c0_i32 = arith.constant 0 : i32
    %c0_i32_0 = arith.constant 0 : i32
    %c0_i32_1 = arith.constant 0 : i32
    %c0_i32_2 = arith.constant 0 : i32
    return %c0_i32, %c0_i32_0, %c0_i32_1 : i32, i32, i32
  }
  func.func @transform_4(%arg0: i32) -> (i32, i32) {
    %c0_i32 = arith.constant 0 : i32
    %c0_i32_0 = arith.constant 0 : i32
    %c0_i32_1 = arith.constant 0 : i32
    return %c0_i32, %c0_i32_0 : i32, i32
  }
}

</mosaic_0001>

<bundles_post_ra>
// kernel: tpu_custom_call.1
= control target key start
LH: loop header
LB: loop body
LE: loop exit
PB: predicated region body
PF: predicated region fallthrough
CT: control target
= control target key end

     0   :  { %9 = vsyncpa [#allocation4], 0  ;;  %s1525_s0 = inlined_call_operand.hbm [shape: f32[2,3000], index: 0, kind: input, shape index: {}]   ;;  %s1526_s1 = inlined_call_operand.hbm [shape: f32[2,3000], index: 1, kind: input, shape index: {}]   ;;  %s1527_s2 = inlined_call_operand.hbm [shape: f32[2,3000], index: 2, kind: input, shape index: {}]   ;;  %s1528_s3 = inlined_call_operand.hbm [shape: f32[2,2,1536], index: 3, kind: input, shape index: {}]   ;;  %s1529_s4 = inlined_call_operand.hbm [shape: f32[1,2], index: 4, kind: output, shape index: {}]  }
   0x1   :  { %11 = vsyncpa [#allocation4 + $0x1], 0 }
   0x2   :  { %12 = vsyncpa [#allocation7], 0 }
   0x3   :  { %14 = vsyncpa [#allocation7 + $0x1], 0 }
   0x4   :  { %15 = vsyncpa [#allocation10], 0 }
   0x5   :  { %16 = vsyncpa [#allocation5], 0  ;;  %s1173_s15 = smov 0   ;;  %s1175_s16 = smov 0  }
   0x6   :  { %s1177_s17 = smov 0   ;;  %s1179_s18 = smov 0  }
   0x7 LB: > { %s1194_s19 = sadd.s32 1, %s1141_s18   ;;  %s29_s20 = sadd.s32 1, %s1137_s17  ;;  %s1141_s18 = sphi %s1179_s18, %s1544_s18   ;;  %s1137_s17 = sphi %s1177_s17, %s1543_s17   ;;  %s1133_s16 = sphi %s1175_s16, %s1542_s16   ;;  %s1129_s15 = sphi %s1173_s15, %s1541_s15  }
   0x8   : > { %s26_s21 = ssub.s32 %s1141_s18, %s1194_s19  ;;  %p36_p0 = scmp.ne.s32.totalorder %s1137_s17, %s1133_s16 }
   0x9   : > { %p27_p1 = scmp.eq.s32.totalorder %s26_s21, 0  ;;  %p37_p2 = scmp.eq.s32.totalorder %s1141_s18, 0 }
   0xa   : > { %p42_p3 = scmp.ne.s32.totalorder %s1133_s16, %s1129_s15  ;;  %p920_p5 = scmp.lt.s32.totalorder %s1141_s18, 2 }
   0xb   : > { %s1205_s22 = scalar_select %p27_p1, %s1137_s17, %s29_s20  }
   0xc   : > { %p38_p4 = por %p37_p2, %p36_p0  ;;  %s174_s23 = sand.u32 1, %s1137_s17  }
   0xd   : > { %s1210_s24 = smul.u32 24, %s1141_s18  ;;  %s194_s27 = sand.u32 1, %s1141_s18  }
   0xe   : > { %s1214_s25 = smul.u32 24, %s174_s23  ;;  %p1216_p6 = pnand %p920_p5, %p38_p4 }
   0xf   : > { %s203_s30 = scalar_lea.hbm %s1526_s1, %s1210_s24  ;;  %s1227_s8 = sadd.s32 4294967295, %s1141_s18  }
  0x10   : > { %s205_s5 = sshll.u32 %s203_s30, 4  ;;  %s198_s6 = scalar_lea.vmem [#allocation6], %s1214_s25  ;;  %s206_s5 = int_to_ptr.hbm [resolvable:$true] %s205_s5 }
  0x11   : > { %s207_s7 = sshll.u32 %s198_s6, 4  ;;  %s1229_s9 = scalar_lea.sflag [#allocation7], %s194_s27  ;;  %s208_s7 = int_to_ptr.vmem [resolvable:$true] %s207_s7 }
  0x12   : > { %s961_s10 = sshra.s32 %s206_s5, 4  ;;  %p965_p8 = pneg %p1216_p6  ;;  %s962_s10 = int_to_ptr.hbm [resolvable:$true] %s961_s10 }
  0x13   : > { %s963_s11 = scalar_lea.hbm %s962_s10, 24  ;;  %s968_s14 = scalar_lea.hbm %s1526_s1, 48 }
  0x14   : > { %p964_p7 = scmp.ne.s32.totalorder %s962_s10, %s963_s11  ;;  %p969_p11 = scmp.lt.s32.totalorder %s962_s10, %s1526_s1 }
  0x15   : > { %p970_p12 = scmp.lt.s32.totalorder %s968_s14, %s963_s11 }
  0x16   : > { %p966_p9 = pnand %p965_p8, %p964_p7 }
  0x17   : > { %p971_p13 = por %p970_p12, %p969_p11 }
  0x18   : > { %p967_p10 = pneg %p966_p9 }
  0x1a   : > { %p972_p0 = pnand %p971_p13, %p967_p10 }
  0x1c   : > { %975 = shalt.err (!%p972_p0)
}
  0x1d   : > { %915 = dma.hbm_to_vmem [thread:$0]  (!%p1216_p6), %s206_s5, 384, %s208_s7, %s1229_s9  }
  0x1e   : > { %p43_p1 = scmp.eq.s32.totalorder %s1227_s8, 0  ;;  %p860_p2 = scmp.ge.s32.totalorder %s1141_s18, 1 }
  0x1f   : > { %p147_p4 = scmp.lt.s32.totalorder %s1141_s18, 3  ;;  %p861_p5 = scmp.ne.s32.totalorder %s1227_s8, 0 }
  0x20   : > { %p1254_p7 = por %p43_p1, %p42_p3  ;;  %s158_s30 = sshll.u32 %s1528_s3, 4  ;;  %s159_s30 = int_to_ptr.hbm [resolvable:$true] %s158_s30 }
  0x21   : > { %p1261_p9 = pnand %p860_p2, %p147_p4  ;;  %s1143_s15 = smov [#allocation9]  }
  0x22   : > { %s160_s18 = sshll.u32 %s1143_s15, 4  ;;  %s183_s10 = scalar_lea.hbm %s1525_s0, %s1210_s24  ;;  %s161_s18 = int_to_ptr.vmem [resolvable:$true] %s160_s18 }
  0x23   : > { %p905_p10 = pneg %p1261_p9  ;;  %s185_s11 = sshll.u32 %s183_s10, 4  ;;  %s186_s11 = int_to_ptr.hbm [resolvable:$true] %s185_s11 }
  0x24   : > { %s1144_s12 = smov 384   ;;  %s1145_s13 = smov 24  }
  0x25   : > { %p906_p3 = pnand %p905_p10, %p43_p1  ;;  %s178_s14 = scalar_lea.vmem [#allocation3], %s1214_s25 }
  0x26   : > { %s187_s20 = sshll.u32 %s178_s14, 4  ;;  %s175_s21 = scalar_lea.sflag [#allocation4], %s174_s23  ;;  %s188_s20 = int_to_ptr.vmem [resolvable:$true] %s187_s20 }
  0x27   : > { %908 = dma.hbm_to_vmem [thread:$0]  (!%p906_p3), %s159_s30, 768, %s161_s18, [#allocation10], %s1144_s12, %s1144_s12, %s1145_s13  }
  0x28   : > { %s1021_s28 = sshra.s32 %s186_s11, 4  ;;  %s1028_s7 = scalar_lea.hbm %s1525_s0, 48  ;;  %s1022_s28 = int_to_ptr.hbm [resolvable:$true] %s1021_s28 }
  0x29   : > { %s1023_s29 = scalar_lea.hbm %s1022_s28, 24  ;;  %p1029_p0 = scmp.lt.s32.totalorder %s1022_s28, %s1525_s0 }
  0x2a   : > { %p1024_p11 = scmp.ne.s32.totalorder %s1022_s28, %s1023_s29  ;;  %p1030_p2 = scmp.lt.s32.totalorder %s1028_s7, %s1023_s29 }
  0x2c   : > { %p1026_p12 = pnand %p1024_p11, %p965_p8  ;;  %p1031_p4 = por %p1030_p2, %p1029_p0 }
  0x2e   : > { %p1027_p13 = pneg %p1026_p12 }
  0x30   : > { %p1032_p10 = pnand %p1031_p4, %p1027_p13 }
  0x32   : > { %1035 = shalt.err (!%p1032_p10)
}
  0x33   : > { %912 = dma.hbm_to_vmem [thread:$0]  (!%p1216_p6), %s186_s11, 384, %s188_s20, %s175_s21  }
  0x34   : > { %s223_s12 = scalar_lea.hbm %s1527_s2, %s1210_s24  ;;  %s218_s13 = scalar_lea.vmem [#allocation8], %s1214_s25 }
  0x35   : > { %s227_s14 = sshll.u32 %s218_s13, 4  ;;  %s225_s15 = sshll.u32 %s223_s12, 4  ;;  %s228_s14 = int_to_ptr.vmem [resolvable:$true] %s227_s14  ;;  %s226_s15 = int_to_ptr.hbm [resolvable:$true] %s225_s15 }
  0x36   : > { %s1051_s28 = sshra.s32 %s226_s15, 4  ;;  %s1058_s11 = scalar_lea.hbm %s1527_s2, 48  ;;  %s1052_s28 = int_to_ptr.hbm [resolvable:$true] %s1051_s28 }
  0x37   : > { %s1053_s29 = scalar_lea.hbm %s1052_s28, 24  ;;  %p1059_p13 = scmp.lt.s32.totalorder %s1052_s28, %s1527_s2 }
  0x38   : > { %p1054_p3 = scmp.ne.s32.totalorder %s1052_s28, %s1053_s29  ;;  %p1060_p0 = scmp.lt.s32.totalorder %s1058_s11, %s1053_s29 }
  0x3a   : > { %p1056_p11 = pnand %p1054_p3, %p965_p8  ;;  %p1061_p2 = por %p1060_p0, %p1059_p13 }
  0x3c   : > { %p1057_p12 = pneg %p1056_p11 }
  0x3e   : > { %p1062_p4 = pnand %p1061_p2, %p1057_p12 }
  0x40   : > { %1065 = shalt.err (!%p1062_p4)
}
  0x41   : > { %918 = dma.hbm_to_vmem [thread:$0]  (!%p1216_p6), %s226_s15, 384, %s228_s14, %s1229_s9  }
  0x42   : > { %236 = sbr.rel (%p1261_p9) target bundleno = 386 (0x182), region = 36  ;;  %s238_s24 = sand.u32 (!%p1261_p9), 1, %s1133_s16  }
  0x43   : > { %s886_s25 = smul.u32 (!%p1261_p9), 24, %s238_s24  ;;  %s239_s10 = scalar_lea.sflag (!%p1261_p9), [#allocation4], %s238_s24 }
  0x45   : > { %s1307_s30 = scalar_lea.vmem (!%p1261_p9), [#allocation3], %s886_s25 }
  0x47   : > { %1112 = dma.done.wait (%p1254_p7), %s239_s10, 384  }
  0x48   : > { %1114 = vsyncadd (%p1254_p7), %s239_s10, 4294966912  ;;  %s248_s26 = sand.u32 1, %s1227_s8   ;;  %s1314_s9 = scalar_lea.vmem [#allocation6], %s886_s25 }
  0x49   : > { %s249_s23 = scalar_lea.sflag [#allocation7], %s248_s26 }
  0x4a   : > { %1116 = dma.done.wait (%p1254_p7), %s249_s23, 768  }
  0x4b   : > { %1118 = vsyncadd (%p1254_p7), %s249_s23, 4294966528  ;;  %s1320_s6 = scalar_lea.vmem [#allocation8], %s886_s25 }
  0x4c   : > { %1120 = dma.done.wait (%p43_p1), [#allocation10], 768  }
  0x4d   : > { %1122 = vsyncadd (%p43_p1), [#allocation10], 4294966528  ;;  %304 = sbr.rel (%p861_p5) target bundleno = 89 (0x59), region = 56 }
  0x52   : > { %v1146_v0 = vmov 0.0  }
  0x53   : > { %305 = vst [vmem:[#allocation2 + $0x28] sm:$0xff] %v1146_v0 }
  0x54   : > { %306 = vst [vmem:[#allocation2 + $0x10] sm:$0xff] %v1146_v0 }
  0x55   : > { %307 = vst [vmem:[#allocation2 + $0x8] sm:$0xff] %v1146_v0 }
  0x56   : > { %308 = vst [vmem:[#allocation2] sm:$0xff] %v1146_v0 }
  0x57   : > { %309 = vst [vmem:[#allocation2 + $0x18] sm:$0xff] %v1146_v0 }
  0x58   : > { %310 = vst [vmem:[#allocation2 + $0x20] sm:$0xff] %v1146_v0 }
  0x59 PF: > { %v311_v1 = vld [vmem:[%s1307_s30] sm:$0xff]  ;;  %v353_v2 = vld [vmem:[%s1314_s9] sm:$0xff]  ;;  %v314_v4 = vlaneseq  ;;  %s327_s27 = smul.u32 1536, %s1227_s8  ;;  %v354_v16 = vld [vmem:[%s1314_s9 + $0x8] sm:$0xff]  ;;  %vm471_vm2 = vcmask 1041408   ;;  %vm473_vm3 = vcmask 1045508  }
  0x5a   : > { %v356_v3 = vld [vmem:[#allocation9] sm:$0xff]  ;;  %v492_v6 = vld [vmem:[%s1320_s6] sm:$0xff]  ;;  %v496_v7 = vld [vmem:[#allocation9 + $0x18] sm:$0xff]  ;;  %vm475_vm4 = vcmask 1043456   ;;  %p875_p6 = scmp.ne.s32.totalorder %s1227_s8, 1 }
  0x5b   : > { %v359_v5 = vsub.f32 %v353_v2, %v356_v3  ;;  %v313_v8 = vld [vmem:[%s1307_s30 + $0x10] sm:$0xff]  ;;  %v499_v9 = vsub.f32 %v492_v6, %v496_v7  ;;  %v355_v10 = vld [vmem:[%s1314_s9 + $0x10] sm:$0xff]  ;;  %v493_v20 = vld [vmem:[%s1320_s6 + $0x8] sm:$0xff]  ;;  %v1337_v22 = vand.u32 127, %v314_v4  ;;  %v1342_v30 = vstv %s327_s27 }
  0x5c   : > { %v358_v11 = vld [vmem:[#allocation9 + $0x10] sm:$0xff]  ;;  %v494_v12 = vld [vmem:[%s1320_s6 + $0x10] sm:$0xff]  ;;  %v498_v15 = vld [vmem:[#allocation9 + $0x28] sm:$0xff] }
  0x5d   : > { %v362_v13 = vadd.f32 %v359_v5, %v311_v1  ;;  %v361_v14 = vsub.f32 %v355_v10, %v358_v11  ;;  %v502_v17 = vadd.f32 %v499_v9, %v311_v1  ;;  %v501_v18 = vsub.f32 %v494_v12, %v498_v15  ;;  %v357_v19 = vld [vmem:[#allocation9 + $0x8] sm:$0xff]  ;;  %v497_v21 = vld [vmem:[#allocation9 + $0x20] sm:$0xff]  ;;  %v312_v28 = vld [vmem:[%s1307_s30 + $0x8] sm:$0xff] }
  0x5e   : > { %v360_v26 = vsub.f32 %v354_v16, %v357_v19  ;;  %v500_v29 = vsub.f32 %v493_v20, %v497_v21  ;;  %v316_v36 = vadd.s32 128, %v1337_v22  ;;  %v317_v37 = vadd.s32 256, %v1337_v22  ;;  %v447_v16 = vld [vmem:[#allocation2 + $0x28] sm:$0xff] }
  0x5f   : > { %v365_v23 = vand.u32 2147483647, %v362_v13  ;;  %v371_v24 = vmul.f32 %v362_v13, %v362_v13  ;;  %v364_v25 = vadd.f32 %v361_v14, %v313_v8  ;;  %v1339_v27 = vadd.f32 %v501_v18, %v313_v8 }
  0x60   : > { %v505_v32 = vand.u32 2147483647, %v502_v17  ;;  %v363_v41 = vadd.f32 %v360_v26, %v312_v28  ;;  %v503_v42 = vadd.f32 %v500_v29, %v312_v28  ;;  %v318_v46 = vadd.s32 384, %v1337_v22 }
  0x61   : > { %vm368_vm0 = vcmp.lt.f32.partialorder %v365_v23, 0.5  ;;  %v869_v31 = vadd.f32 -0.25, %v365_v23  ;;  %v367_v33 = vand.u32 2147483647, %v364_v25  ;;  %v373_v34 = vmul.f32 %v364_v25, %v364_v25 }
  0x62   : > { %v507_v35 = vand.u32 2147483647, %v1339_v27  ;;  %v1351_v43 = vadd.f32 -0.25, %v505_v32  ;;  %v366_v44 = vand.u32 2147483647, %v363_v41  ;;  %v372_v45 = vmul.f32 %v363_v41, %v363_v41 }
  0x63   : > { %v377_v38 = vsel %vm368_vm0, %v371_v24, %v869_v31  ;;  %vm1347_vm1 = vcmp.lt.f32.partialorder %v367_v33, 0.5  ;;  %v871_v40 = vadd.f32 -0.25, %v367_v33  ;;  %v506_v49 = vand.u32 2147483647, %v503_v42 }
  0x64   : > { %407 = vst [vmem:[#allocation1] ss:$4 sm:$0xff] %v377_v38  ;;  %v1356_v48 = vadd.f32 -0.25, %v507_v35  ;;  %v1360_v50 = vadd.s32 %v1342_v30, %v1337_v22  ;;  %vm369_vm5 = vcmp.lt.f32.partialorder %v366_v44, 0.5  ;;  %v870_v51 = vadd.f32 -0.25, %v366_v44 }
  0x65   : > { %v379_v47 = vsel %vm1347_vm1, %v373_v34, %v871_v40  ;;  %v1363_v52 = vadd.s32 %v1342_v30, %v316_v36  ;;  %v1366_v53 = vadd.s32 %v1342_v30, %v317_v37  ;;  %v512_v54 = vmul.f32 %v503_v42, %v503_v42 }
  0x66   : > { %v873_v55 = vadd.f32 -0.25, %v506_v49  ;;  %v1369_v56 = vadd.s32 %v1342_v30, %v318_v46  ;;  %vm341_vm6 = vcmp.lt.s32.totalorder %v1360_v50, 3000  ;;  %vm1372_vm7 = vcmp.lt.f32.partialorder %v505_v32, 0.5 }
  0x67   : > { %v378_v58 = vsel %vm369_vm5, %v372_v45, %v870_v51  ;;  %vm342_vm8 = vcmp.lt.s32.totalorder %v1363_v52, 3000  ;;  %vm1377_vm9 = vcmp.lt.f32.partialorder %v506_v49, 0.5  ;;  %v323_v60 = vadd.s32 1024, %v1337_v22 }
  0x68   : > { %409 = vst [vmem:[#allocation1 + $0x20] ss:$4 sm:$0xff] %v378_v58  ;;  %vm343_vm10 = vcmp.lt.s32.totalorder %v1366_v53, 3000  ;;  %vm344_vm11 = vcmp.lt.s32.totalorder %v1369_v56, 3000  ;;  %v324_v61 = vadd.s32 1152, %v1337_v22  ;;  %v325_v62 = vadd.s32 1280, %v1337_v22 }
  0x69   : > { %v1387_v1 = vadd.s32 %v1342_v30, %v323_v60  ;;  %v511_v2 = vmul.f32 %v502_v17, %v502_v17  ;;  %v518_v5 = vsel %vm1377_vm9, %v512_v54, %v873_v55  ;;  %v326_v15 = vadd.s32 1408, %v1337_v22  ;;  %v449_v55 = vld [vmem:[#allocation2 + $0x8] sm:$0xff] }
  0x6a   : > { %v1392_v6 = vadd.s32 %v1342_v30, %v324_v61  ;;  %v1395_v7 = vadd.s32 %v1342_v30, %v325_v62  ;;  %v319_v17 = vadd.s32 512, %v1337_v22  ;;  %vm1410_vm15 = vcmp.lt.f32.partialorder %v507_v35, 0.5  ;;  %v448_v62 = vld [vmem:[#allocation2 + $0x10] sm:$0xff] }
  0x6b   : > { %v410_v63 = vld.sshfl [vmem:[#allocation1] sm:$0xff pattern:$0x73625140]  ;;  %v411_v0 = vld.sshfl [vmem:[#allocation1 + $0x8] sm:$0xff pattern:$0x73625140]  ;;  %v1417_v21 = vadd.s32 %v1342_v30, %v326_v15  ;;  %v517_v36 = vsel %vm1372_vm7, %v511_v2, %v1351_v43  ;;  %v513_v44 = vmul.f32 %v1339_v27, %v1339_v27 }
  0x6c   : > { %v412_v3 = vld.sshfl [vmem:[#allocation1 + $0x10] sm:$0xff pattern:$0x73625140]  ;;  %v413_v4 = vld.sshfl [vmem:[#allocation1 + $0x18] sm:$0xff pattern:$0x73625140]  ;;  %v333_v28 = vadd.s32 %v1342_v30, %v319_v17 }
  0x6d   : > { %418 = vst [vmem:[#allocation1] ss:$4 sm:$0xff] %v379_v47  ;;  %v435_v8 = vsel %vm341_vm6, %v410_v63, 0.0  ;;  %v436_v9 = vsel %vm342_vm8, %v411_v0, 0.0  ;;  %v437_v10 = vsel %vm343_vm10, %v412_v3, 0.0  ;;  %v438_v11 = vsel %vm344_vm11, %v413_v4, 0.0 }
  0x6e   : > { %v462_v12 = vrot.slane %v436_v9, 6  ;;  %v463_v13 = vrot.slane %v437_v10, 4  ;;  %v464_v14 = vrot.slane %v438_v11, 2  ;;  %vm349_vm12 = vcmp.lt.s32.totalorder %v1387_v1, 3000 }
  0x6f   : > { %vm350_vm13 = vcmp.lt.s32.totalorder %v1392_v6, 3000  ;;  %vm351_vm14 = vcmp.lt.s32.totalorder %v1395_v7, 3000  ;;  %v320_v23 = vadd.s32 640, %v1337_v22  ;;  %v414_v25 = vld.sshfl [vmem:[#allocation1 + $0x20] sm:$0xff pattern:$0x73625140]  ;;  %v519_v2 = vsel %vm1410_vm15, %v513_v44, %v1356_v48 }
  0x70   : > { %v472_v19 = vsel %vm471_vm2, %v435_v8, %v462_v12  ;;  %v474_v20 = vsel %vm473_vm3, %v463_v13, %v464_v14  ;;  %v415_v26 = vld.sshfl [vmem:[#allocation1 + $0x28] sm:$0xff pattern:$0x73625140]  ;;  %v416_v31 = vld.sshfl [vmem:[#allocation1 + $0x30] sm:$0xff pattern:$0x73625140] }
  0x71   : > { %v476_v24 = vsel %vm475_vm4, %v472_v19, %v474_v20  ;;  %v417_v32 = vld.sshfl [vmem:[#allocation1 + $0x38] sm:$0xff pattern:$0x73625140]  ;;  %v334_v33 = vadd.s32 %v1342_v30, %v320_v23  ;;  %vm352_vm0 = vcmp.lt.s32.totalorder %v1417_v21, 3000  ;;  %v321_v34 = vadd.s32 768, %v1337_v22 }
  0x72   : > { %v486_v29 = vadd.f32 %v476_v24, %v447_v16  ;;  %525 = vst [vmem:[#allocation1 + $0x20] ss:$4 sm:$0xff] %v518_v5  ;;  %v322_v35 = vadd.s32 896, %v1337_v22  ;;  %vm345_vm1 = vcmp.lt.s32.totalorder %v333_v28, 3000 }
  0x73   : > { %vm346_vm5 = vcmp.lt.s32.totalorder %v334_v33, 3000  ;;  %v439_v38 = vsel %vm345_vm1, %v414_v25, 0.0  ;;  %v335_v41 = vadd.s32 %v1342_v30, %v321_v34  ;;  %v564_v34 = vld [vmem:[#allocation2] sm:$0xff] }
  0x74   : > { %489 = vst [vmem:[#allocation2 + $0x28] sm:$0xff] %v486_v29  ;;  %v419_v37 = vld.sshfl [vmem:[#allocation1] sm:$0xff pattern:$0x73625140]  ;;  %v336_v42 = vadd.s32 %v1342_v30, %v322_v35  ;;  %v440_v27 = vsel %vm346_vm5, %v415_v26, 0.0 }
  0x75   : > { %v420_v39 = vld.sshfl [vmem:[#allocation1 + $0x8] sm:$0xff pattern:$0x73625140]  ;;  %v421_v40 = vld.sshfl [vmem:[#allocation1 + $0x10] sm:$0xff pattern:$0x73625140] }
  0x76   : > { %v422_v22 = vld.sshfl [vmem:[#allocation1 + $0x18] sm:$0xff pattern:$0x73625140]  ;;  %v443_v45 = vsel %vm349_vm12, %v419_v37, 0.0  ;;  %v444_v43 = vsel %vm350_vm13, %v420_v39, 0.0  ;;  %v445_v46 = vsel %vm351_vm14, %v421_v40, 0.0 }
  0x77   : > { %523 = vst [vmem:[#allocation1] ss:$4 sm:$0xff] %v517_v36  ;;  %v446_v47 = vsel %vm352_vm0, %v422_v22, 0.0  ;;  %v468_v49 = vrot.slane %v444_v43, 6  ;;  %v469_v51 = vrot.slane %v445_v46, 4  ;;  %vm347_vm7 = vcmp.lt.s32.totalorder %v335_v41, 3000 }
  0x78   : > { %v470_v30 = vrot.slane %v446_v47, 2  ;;  %vm348_vm9 = vcmp.lt.s32.totalorder %v336_v42, 3000  ;;  %v441_v54 = vsel %vm347_vm7, %v416_v31, 0.0  ;;  %v465_v59 = vrot.slane %v440_v27, 6  ;;  %v565_v37 = vld [vmem:[#allocation2 + $0x18] sm:$0xff]  ;;  %v566_v27 = vld [vmem:[#allocation2 + $0x20] sm:$0xff] }
  0x79   : > { %v480_v57 = vsel %vm471_vm2, %v443_v45, %v468_v49  ;;  %v442_v58 = vsel %vm348_vm9, %v417_v32, 0.0  ;;  %v466_v60 = vrot.slane %v441_v54, 4  ;;  %v530_v0 = vld.sshfl [vmem:[#allocation1 + $0x20] sm:$0xff pattern:$0x73625140] }
  0x7a   : > { %v481_v61 = vsel %vm473_vm3, %v469_v51, %v470_v30  ;;  %v467_v63 = vrot.slane %v442_v58, 2  ;;  %v477_v4 = vsel %vm471_vm2, %v439_v38, %v465_v59  ;;  %v531_v5 = vld.sshfl [vmem:[#allocation1 + $0x28] sm:$0xff pattern:$0x73625140]  ;;  %v555_v12 = vsel %vm345_vm1, %v530_v0, 0.0 }
  0x7b   : > { %v482_v3 = vsel %vm475_vm4, %v480_v57, %v481_v61  ;;  %v532_v8 = vld.sshfl [vmem:[#allocation1 + $0x30] sm:$0xff pattern:$0x73625140]  ;;  %v533_v11 = vld.sshfl [vmem:[#allocation1 + $0x38] sm:$0xff pattern:$0x73625140] }
  0x7c   : > { %v488_v9 = vadd.f32 %v482_v3, %v449_v55  ;;  %v478_v10 = vsel %vm473_vm3, %v466_v60, %v467_v63  ;;  %v556_v13 = vsel %vm346_vm5, %v531_v5, 0.0  ;;  %v557_v15 = vsel %vm347_vm7, %v532_v8, 0.0 }
  0x7d   : > { %v479_v14 = vsel %vm475_vm4, %v477_v4, %v478_v10  ;;  %v558_v48 = vsel %vm348_vm9, %v533_v11, 0.0  ;;  %v582_v16 = vrot.slane %v556_v13, 6  ;;  %v583_v32 = vrot.slane %v557_v15, 4 }
  0x7e   : > { %v526_v17 = vld.sshfl [vmem:[#allocation1] sm:$0xff pattern:$0x73625140]  ;;  %v527_v18 = vld.sshfl [vmem:[#allocation1 + $0x8] sm:$0xff pattern:$0x73625140]  ;;  %v487_v19 = vadd.f32 %v479_v14, %v448_v62 }
  0x7f   : > { %v528_v20 = vld.sshfl [vmem:[#allocation1 + $0x10] sm:$0xff pattern:$0x73625140]  ;;  %v529_v23 = vld.sshfl [vmem:[#allocation1 + $0x18] sm:$0xff pattern:$0x73625140]  ;;  %v591_v52 = vsel %vm471_vm2, %v555_v12, %v582_v16 }
  0x80   : > { %534 = vst [vmem:[#allocation1] ss:$4 sm:$0xff] %v519_v2  ;;  %v552_v24 = vsel %vm342_vm8, %v527_v18, 0.0  ;;  %v553_v25 = vsel %vm343_vm10, %v528_v20, 0.0  ;;  %v554_v26 = vsel %vm344_vm11, %v529_v23, 0.0  ;;  %v551_v33 = vsel %vm341_vm6, %v526_v17, 0.0 }
  0x81   : > { %491 = vst [vmem:[#allocation2 + $0x8] sm:$0xff] %v488_v9  ;;  %v579_v28 = vrot.slane %v552_v24, 6  ;;  %v580_v29 = vrot.slane %v553_v25, 4  ;;  %v581_v31 = vrot.slane %v554_v26, 2  ;;  %v584_v35 = vrot.slane %v558_v48, 2 }
  0x82   : > { %490 = vst [vmem:[#allocation2 + $0x10] sm:$0xff] %v487_v19 }
  0x83   : > { %v588_v36 = vsel %vm471_vm2, %v551_v33, %v579_v28  ;;  %v589_v53 = vsel %vm473_vm3, %v580_v29, %v581_v31  ;;  %v592_v38 = vsel %vm473_vm3, %v583_v32, %v584_v35 }
  0x84   : > { %v590_v56 = vsel %vm475_vm4, %v588_v36, %v589_v53  ;;  %v593_v40 = vsel %vm475_vm4, %v591_v52, %v592_v38 }
  0x85   : > { %v600_v39 = vadd.f32 %v590_v56, %v564_v34  ;;  %v601_v41 = vadd.f32 %v593_v40, %v565_v37 }
  0x87   : > { %603 = vst [vmem:[#allocation2] sm:$0xff] %v600_v39  ;;  %v535_v50 = vld.sshfl [vmem:[#allocation1] sm:$0xff pattern:$0x73625140] }
  0x88   : > { %604 = vst [vmem:[#allocation2 + $0x18] sm:$0xff] %v601_v41  ;;  %v536_v42 = vld.sshfl [vmem:[#allocation1 + $0x8] sm:$0xff pattern:$0x73625140]  ;;  %v559_v30 = vsel %vm349_vm12, %v535_v50, 0.0 }
  0x89   : > { %v537_v44 = vld.sshfl [vmem:[#allocation1 + $0x10] sm:$0xff pattern:$0x73625140]  ;;  %v538_v22 = vld.sshfl [vmem:[#allocation1 + $0x18] sm:$0xff pattern:$0x73625140] }
  0x8a   : > { %v560_v45 = vsel %vm350_vm13, %v536_v42, 0.0  ;;  %v561_v43 = vsel %vm351_vm14, %v537_v44, 0.0  ;;  %v562_v46 = vsel %vm352_vm0, %v538_v22, 0.0 }
  0x8b   : > { %v585_v47 = vrot.slane %v560_v45, 6  ;;  %v586_v49 = vrot.slane %v561_v43, 4  ;;  %v587_v51 = vrot.slane %v562_v46, 2 }
  0x8d   : > { %v594_v54 = vsel %vm471_vm2, %v559_v30, %v585_v47  ;;  %v595_v55 = vsel %vm473_vm3, %v586_v49, %v587_v51  ;;  %609 = sbr.rel (%p875_p6) target bundleno = 380 (0x17c), region = 60 }
  0x8e   : > { %v596_v6 = vsel %vm475_vm4, %v594_v54, %v595_v55 }
  0x8f   : > { %v602_v57 = vadd.f32 %v596_v6, %v566_v27 }
  0x91   : > { %605 = vst [vmem:[#allocation2 + $0x20] sm:$0xff] %v602_v57 }
  0x92   : > { %v610_v7 = vld [vmem:[#allocation2 + $0x28] sm:$0xff]  ;;  %v611_v21 = vld [vmem:[#allocation2 + $0x10] sm:$0xff]  ;;  %v680_v60 = vld [vmem:[#allocation2 + $0x18] sm:$0xff] }
  0x93   : > { %616 = vst [vmem:[#allocation1] ss:$4 sm:$0xff] %v610_v7  ;;  %v612_v58 = vld [vmem:[#allocation2 + $0x8] sm:$0xff]  ;;  %v679_v48 = vld [vmem:[#allocation2] sm:$0xff] }
  0x94   : > { %618 = vst [vmem:[#allocation1 + $0x20] ss:$4 sm:$0xff] %v611_v21 }
  0x98   : > { %v681_v33 = vld [vmem:[#allocation2 + $0x20] sm:$0xff] }
  0x9a   : > { %v619_v59 = vld.sshfl [vmem:[#allocation1] sm:$0xff pattern:$0x73625140]  ;;  %v620_v1 = vld.sshfl [vmem:[#allocation1 + $0x8] sm:$0xff pattern:$0x73625140] }
  0x9b   : > { %v621_v61 = vld.sshfl [vmem:[#allocation1 + $0x10] sm:$0xff pattern:$0x73625140]  ;;  %v622_v62 = vld.sshfl [vmem:[#allocation1 + $0x18] sm:$0xff pattern:$0x73625140] }
  0x9c   : > { %v623_v63 = vld.sshfl [vmem:[#allocation1 + $0x20] sm:$0xff pattern:$0x73625140]  ;;  %v624_v0 = vld.sshfl [vmem:[#allocation1 + $0x28] sm:$0xff pattern:$0x73625140] }
  0x9d   : > { %v625_v2 = vld.sshfl [vmem:[#allocation1 + $0x30] sm:$0xff pattern:$0x73625140]  ;;  %v626_v3 = vld.sshfl [vmem:[#allocation1 + $0x38] sm:$0xff pattern:$0x73625140] }
  0x9e   : > { %627 = vst [vmem:[#allocation1] ss:$4 sm:$0xff] %v612_v58  ;;  %v644_v4 = vsel %vm471_vm2, %v619_v59, 0.0  ;;  %v645_v5 = vsel %vm471_vm2, %v620_v1, 0.0  ;;  %v647_v8 = vsel %vm471_vm2, %v621_v61, 0.0  ;;  %v649_v10 = vsel %vm471_vm2, %v622_v62, 0.0 }
  0x9f   : > { %v646_v9 = vadd.f32 %v645_v5, %v644_v4  ;;  %687 = vst [vmem:[#allocation1 + $0x20] ss:$4 sm:$0xff] %v680_v60  ;;  %v651_v12 = vsel %vm471_vm2, %v623_v63, 0.0  ;;  %v653_v14 = vsel %vm471_vm2, %v624_v0, 0.0  ;;  %v655_v15 = vsel %vm471_vm2, %v625_v2, 0.0 }
  0xa0   : > { %v657_v24 = vsel %vm471_vm2, %v626_v3, 0.0 }
  0xa1   : > { %v648_v11 = vadd.f32 %v647_v8, %v646_v9 }
  0xa3   : > { %v650_v13 = vadd.f32 %v649_v10, %v648_v11 }
  0xa5   : > { %v628_v16 = vld.sshfl [vmem:[#allocation1] sm:$0xff pattern:$0x73625140]  ;;  %v629_v17 = vld.sshfl [vmem:[#allocation1 + $0x8] sm:$0xff pattern:$0x73625140]  ;;  %v652_v18 = vadd.f32 %v651_v12, %v650_v13 }
  0xa6   : > { %v630_v19 = vld.sshfl [vmem:[#allocation1 + $0x10] sm:$0xff pattern:$0x73625140]  ;;  %v631_v20 = vld.sshfl [vmem:[#allocation1 + $0x18] sm:$0xff pattern:$0x73625140] }
  0xa7   : > { %v654_v23 = vadd.f32 %v653_v14, %v652_v18  ;;  %685 = vst [vmem:[#allocation1] ss:$4 sm:$0xff] %v679_v48  ;;  %v659_v26 = vsel %vm471_vm2, %v628_v16, 0.0  ;;  %v661_v29 = vsel %vm471_vm2, %v629_v17, 0.0  ;;  %v663_v32 = vsel %vm471_vm2, %v630_v19, 0.0 }
  0xa8   : > { %v665_v37 = vsel %vm471_vm2, %v631_v20, 0.0  ;;  %v692_v41 = vld.sshfl [vmem:[#allocation1 + $0x20] sm:$0xff pattern:$0x73625140] }
  0xa9   : > { %v656_v25 = vadd.f32 %v655_v15, %v654_v23  ;;  %v693_v22 = vld.sshfl [vmem:[#allocation1 + $0x28] sm:$0xff pattern:$0x73625140]  ;;  %v720_v43 = vsel %vm471_vm2, %v692_v41, 0.0 }
  0xaa   : > { %v694_v46 = vld.sshfl [vmem:[#allocation1 + $0x30] sm:$0xff pattern:$0x73625140]  ;;  %v722_v49 = vsel %vm471_vm2, %v693_v22, 0.0 }
  0xab   : > { %v658_v28 = vadd.f32 %v657_v24, %v656_v25  ;;  %v695_v51 = vld.sshfl [vmem:[#allocation1 + $0x38] sm:$0xff pattern:$0x73625140]  ;;  %v724_v27 = vsel %vm471_vm2, %v694_v46, 0.0 }
  0xac   : > { %v726_v6 = vsel %vm471_vm2, %v695_v51, 0.0 }
  0xad   : > { %v660_v31 = vadd.f32 %v659_v26, %v658_v28 }
  0xae   : > { %v688_v34 = vld.sshfl [vmem:[#allocation1] sm:$0xff pattern:$0x73625140]  ;;  %v689_v35 = vld.sshfl [vmem:[#allocation1 + $0x8] sm:$0xff pattern:$0x73625140] }
  0xaf   : > { %v662_v52 = vadd.f32 %v661_v29, %v660_v31  ;;  %v690_v36 = vld.sshfl [vmem:[#allocation1 + $0x10] sm:$0xff pattern:$0x73625140]  ;;  %v691_v53 = vld.sshfl [vmem:[#allocation1 + $0x18] sm:$0xff pattern:$0x73625140] }
  0xb0   : > { %696 = vst [vmem:[#allocation1] ss:$4 sm:$0xff] %v681_v33  ;;  %v713_v56 = vsel %vm471_vm2, %v688_v34, 0.0  ;;  %v714_v38 = vsel %vm471_vm2, %v689_v35, 0.0  ;;  %v716_v39 = vsel %vm471_vm2, %v690_v36, 0.0  ;;  %v718_v42 = vsel %vm471_vm2, %v691_v53, 0.0 }
  0xb1   : > { %v664_v40 = vadd.f32 %v663_v32, %v662_v52  ;;  %v715_v50 = vadd.f32 %v714_v38, %v713_v56 }
  0xb3   : > { %v666_v44 = vadd.f32 %v665_v37, %v664_v40  ;;  %v717_v45 = vadd.f32 %v716_v39, %v715_v50 }
  0xb5   : > { %667 = vadd.xlane.f32.xlu0 %v666_v44  ;;  %v719_v47 = vadd.f32 %v718_v42, %v717_v45 }
  0xb7   : > { %v721_v30 = vadd.f32 %v720_v43, %v719_v47  ;;  %v697_v54 = vld.sshfl [vmem:[#allocation1] sm:$0xff pattern:$0x73625140]  ;;  %v698_v57 = vld.sshfl [vmem:[#allocation1 + $0x8] sm:$0xff pattern:$0x73625140] }
  0xb8   : > { %v728_v21 = vsel %vm471_vm2, %v697_v54, 0.0  ;;  %v699_v58 = vld.sshfl [vmem:[#allocation1 + $0x10] sm:$0xff pattern:$0x73625140]  ;;  %v730_v1 = vsel %vm471_vm2, %v698_v57, 0.0 }
  0xb9   : > { %v723_v55 = vadd.f32 %v722_v49, %v721_v30  ;;  %v700_v60 = vld.sshfl [vmem:[#allocation1 + $0x18] sm:$0xff pattern:$0x73625140]  ;;  %v732_v62 = vsel %vm471_vm2, %v699_v58, 0.0 }
  0xba   : > { %v734_v0 = vsel %vm471_vm2, %v700_v60, 0.0 }
  0xbb   : > { %v725_v7 = vadd.f32 %v724_v27, %v723_v55 }
  0xbd   : > { %v727_v59 = vadd.f32 %v726_v6, %v725_v7 }
  0xbf   : > { %v729_v61 = vadd.f32 %v728_v21, %v727_v59 }
  0xc1   : > { %v731_v63 = vadd.f32 %v730_v1, %v729_v61 }
  0xc3   : > { %v733_v2 = vadd.f32 %v732_v62, %v731_v63 }
  0xc5   : > { %v735_v3 = vadd.f32 %v734_v0, %v733_v2 }
  0xc7   : > { %736 = vadd.xlane.f32.xlu0 %v735_v3 }
 0x128   : > { %v668_v4 = vpop.xlane.xlu0 %667 }
 0x129   : > { %v669_v5 = vrot.slane %v668_v4, 4 }
 0x12b   : > { %v670_v8 = vadd.f32 %v669_v5, %v668_v4 }
 0x12d   : > { %v671_v9 = vrot.slane %v670_v8, 2 }
 0x12f   : > { %v672_v10 = vadd.f32 %v671_v9, %v670_v8 }
 0x131   : > { %v673_v11 = vrot.slane %v672_v10, 1 }
 0x133   : > { %v674_v12 = vadd.f32 %v673_v11, %v672_v10 }
 0x135   : > { %887 = vpush %v674_v12 }
 0x13a   : > { %v737_v13 = vpop.xlane.xlu0 %736 }
 0x13b   : > { %v738_v14 = vrot.slane %v737_v13, 4 }
 0x13d   : > { %v739_v15 = vadd.f32 %v738_v14, %v737_v13 }
 0x13f   : > { %v740_v48 = vrot.slane %v739_v15, 2 }
 0x141   : > { %v741_v16 = vadd.f32 %v740_v48, %v739_v15 }
 0x143   : > { %v742_v17 = vrot.slane %v741_v16, 1 }
 0x145   : > { %v743_v18 = vadd.f32 %v742_v17, %v741_v16 }
 0x147   : > { %889 = vpush %v743_v18 }
 0x166   : > { %s888_s18 = spop %887 }
 0x167   : > { %s676_s12 = smul.f32 0.00033333333, %s888_s18 }
 0x169   : > { %678 = sst [smem:[#allocation11]] %s676_s12 }
 0x178   : > { %s890_s13 = spop %889 }
 0x179   : > { %s745_s14 = smul.f32 0.00033333333, %s890_s13 }
 0x17b   : > { %747 = sst [smem:[#allocation11 + $0x1]] %s745_s14 }
 0x17c PF: > { %p922_p8 = scmp.eq.s32.totalorder %s1227_s8, 1  ;;  %s754_s29 = sshll.u32 %s1529_s4, 4  ;;  %s755_s29 = int_to_ptr.hbm [resolvable:$true] %s754_s29 }
 0x17d   : > { %s1147_s5 = smov [#allocation11]  }
 0x17e   : > { %902 = dma.smem_to_hbm (%p922_p8), %s1147_s5, 16, %s755_s29, [#allocation5]  }
 0x17f   : > { %1124 = dma.done.wait (%p922_p8), [#allocation5], 16  }
 0x180   : > { %1126 = vsyncadd (%p922_p8), [#allocation5], 4294967280 }
 0x181   : > { %763 = sfence }
 0x182 PF: > { %p19_p1 = scmp.ge.s32.totalorder %s1194_s19, 4   ;;  %s1541_s15 = smov %s1133_s16 }
 0x183   : > { %s1542_s16 = smov %s1137_s17  ;;  %s1543_s17 = smov %s1205_s22 }
 0x184   : > { %s1544_s18 = smov %s1194_s19  ;;  %21 = sbr.rel (!%p19_p1) target bundleno = 7 (0x7), region = 117 }
 0x189   :  { %769 = vsyncpa [#allocation4], 1 }
 0x18a   :  { %771 = vsyncpa [#allocation4 + $0x1], 1 }
 0x18b   :  { %772 = vsyncpa [#allocation7], 1 }
 0x18c   :  { %774 = vsyncpa [#allocation7 + $0x1], 1 }
 0x18d   :  { %775 = vsyncpa [#allocation10], 1 }
 0x18e   :  { %776 = vsyncpa [#allocation5], 1 }
 0x18f   :  { %778 = vsyncpa [#allocation5 + $0x1], 1 }

</bundles_post_ra>
